<compile_context>
chip_gen: v5e
topology: v5e:2x2
jax: 0.10.0
libtpu: 0.0.40
codegen_flags: <defaults>
</compile_context>

<pallas_src>
import functools

import jax
import jax.numpy as jnp
from jax import lax
from jax.experimental import pallas as pl
from jax.experimental.pallas import tpu as pltpu


def _round_up(x, m):
    return ((x + m - 1) // m) * m


def _default_bf16_epilogue():
    """bf16 bias+ReLU epilogue only on chips with bf16 VPU ALUs (v6e / v7x)."""
    try:
        kind = jax.devices()[0].device_kind.lower()
    except Exception:
        return False
    for tag in ("v2", "v3", "v4", "v5"):
        if tag in kind:
            return False
    return ("v6" in kind) or ("v7" in kind)


def _pick_tb(batch, tb_max=512):
    """Batch tile: big enough to amortize ~0.35us/step grid overhead, but keep
    >= 2 tiles (when the batch permits) so v7x's two TensorCores both work.
    Multiple of 128 keeps tiles lane/sublane aligned and output stores unmasked."""
    tb_max = max(128, _round_up(tb_max, 128))
    half = _round_up(max(1, -(-batch // 2)), 128)
    return min(tb_max, half)


def prepare_params(params, *, bf16_epilogue=None):
    """One-time parameter prep (pad + cast). Call once, reuse across forwards."""
    if bf16_epilogue is None:
        bf16_epilogue = _default_bf16_epilogue()

    P, Q = params["P"], params["Q"]
    layers = params["layers"]
    h = params["h"]

    k = P.shape[1]
    k_pad = _round_up(k, 64)          # 2 * k_pad is a multiple of 128 lanes
    f0p = 2 * k_pad

    # Pre-padded, pre-cast embedding tables: gather+concat yields the kernel
    # operand directly (no per-call pad/cast pass over the streamed input).
    Pp = jnp.zeros((P.shape[0], k_pad), jnp.bfloat16).at[:, :k].set(
        P.astype(jnp.bfloat16))
    Qp = jnp.zeros((Q.shape[0], k_pad), jnp.bfloat16).at[:, :k].set(
        Q.astype(jnp.bfloat16))

    bias_dtype = jnp.bfloat16 if bf16_epilogue else jnp.float32

    Ws, out_pads, bias_rows = [], [], []
    prev_p = f0p
    for li, (W, b) in enumerate(layers):
        in_f, out_f = W.shape
        out_p = _round_up(out_f, 128)
        Wp = jnp.zeros((prev_p, out_p), jnp.bfloat16)
        if li == 0:
            # First layer rows follow the padded [user(k_pad) | item(k_pad)] layout.
            Wp = Wp.at[:k, :out_f].set(W[:k].astype(jnp.bfloat16))
            Wp = Wp.at[k_pad:k_pad + k, :out_f].set(W[k:2 * k].astype(jnp.bfloat16))
        else:
            Wp = Wp.at[:in_f, :out_f].set(W.astype(jnp.bfloat16))
        Ws.append(Wp)
        bias_rows.append((out_f, b))
        out_pads.append(out_p)
        prev_p = out_p

    # Pack all biases into one operand (cuts BlockSpec / descriptor count).
    max_out_p = max(out_pads)
    b_packed = jnp.zeros((len(layers), max_out_p), bias_dtype)
    for li, (out_f, b) in enumerate(bias_rows):
        b_packed = b_packed.at[li, :out_f].set(b.astype(bias_dtype))

    # Final projection vector stored as a lane-dense bf16 row (1, prev_p).
    h_row = jnp.zeros((1, prev_p), jnp.bfloat16).at[0, :h.shape[0]].set(
        h[:, 0].astype(jnp.bfloat16))

    return {
        "P": Pp, "Q": Qp, "Ws": Ws, "b_packed": b_packed, "h_row": h_row,
        # Static metadata (plain Python values; mark static if jitting).
        "meta": dict(k=k, k_pad=k_pad, f0p=f0p, out_pads=tuple(out_pads),
                     n_layers=len(layers), bf16_epilogue=bool(bf16_epilogue)),
    }


def _vmem_limit_bytes(tb, f0p, prepped):
    """Honest VMEM ask: double-buffered footprint of every operand + headroom."""
    nbytes = 2 * tb * f0p * 2                                   # X tile (bf16)
    for w in prepped["Ws"]:
        nbytes += 2 * int(w.size) * 2                           # weights (bf16)
    nbytes += 2 * int(prepped["b_packed"].size) * prepped["b_packed"].dtype.itemsize
    nbytes += 2 * int(prepped["h_row"].size) * 2
    nbytes += 2 * tb * 4                                        # out tile (f32)
    return max(4 * 1024 * 1024, 2 * nbytes + (2 << 20))


def _mlp_kernel(n_layers, out_pads, bf16_epilogue, *refs):
    # refs = (x, W_1 .. W_n, b_packed, h_row, out)
    x_ref = refs[0]
    w_refs = refs[1:1 + n_layers]
    b_ref = refs[1 + n_layers]        # (n_layers, max_out_p) f32 or bf16
    h_ref = refs[2 + n_layers]        # (1, last_out_p) bf16
    out_ref = refs[3 + n_layers]      # (1, TB) f32, lane-dense

    x = x_ref[...]                    # (TB, F0p) bf16
    for li in range(n_layers):
        out_p = out_pads[li]
        w = w_refs[li][...]                                   # (prev_p, out_p) bf16
        b = b_ref[li:li + 1, :out_p]                          # (1, out_p)
        y = jnp.dot(x, w, preferred_element_type=jnp.float32)  # f32 MXU acc
        if bf16_epilogue:
            # v6e / v7x: bf16 VPU epilogue halves VALU vreg-ops per layer.
            y = y.astype(jnp.bfloat16) + b
            x = jnp.maximum(y, 0.0)
        else:
            # v5e and older: no bf16 VPU ALUs -> keep the epilogue in f32.
            y = y + b
            x = jnp.maximum(y, 0.0).astype(jnp.bfloat16)

    # Final bias-free projection, lane-dense: (1, Fp) . (TB, Fp)^T -> (1, TB).
    out_ref[...] = lax.dot_general(
        h_ref[...], x, (((1,), (1,)), ((), ())),
        preferred_element_type=jnp.float32)


def mlp_forward(user_ids, item_ids, prepped, *, tb_max=512):
    """Forward pass matching the PyTorch MLP module. Returns (B, 1) float32."""
    meta = prepped["meta"]
    f0p = meta["f0p"]
    n_layers = meta["n_layers"]
    out_pads = meta["out_pads"]
    bf16_epilogue = meta["bf16_epilogue"]

    B = user_ids.shape[0]
    tb = _pick_tb(B, tb_max)
    num_tiles = pl.cdiv(B, tb)
    Bp = num_tiles * tb

    # Pad the (cheap) id vectors instead of the gathered activations.
    if Bp != B:
        pad = Bp - B
        user_ids = jnp.concatenate([user_ids, jnp.zeros((pad,), user_ids.dtype)])
        item_ids = jnp.concatenate([item_ids, jnp.zeros((pad,), item_ids.dtype)])

    # Gather from the pre-padded bf16 tables -> lane-aligned operand directly.
    pu = jnp.take(prepped["P"], user_ids, axis=0)    # (Bp, k_pad) bf16
    qi = jnp.take(prepped["Q"], item_ids, axis=0)    # (Bp, k_pad) bf16
    X = jnp.concatenate([pu, qi], axis=1)            # (Bp, f0p)  bf16

    operands = [X] + list(prepped["Ws"]) + [prepped["b_packed"], prepped["h_row"]]
    in_specs = [pl.BlockSpec((tb, f0p), lambda i: (i, 0))]
    # Weights / biases / h: constant index maps -> VMEM-resident, DMA'd once.
    in_specs += [pl.BlockSpec(tuple(w.shape), lambda i: (0, 0))
                 for w in prepped["Ws"]]
    in_specs += [pl.BlockSpec(tuple(prepped["b_packed"].shape), lambda i: (0, 0)),
                 pl.BlockSpec(tuple(prepped["h_row"].shape), lambda i: (0, 0))]

    kernel = functools.partial(_mlp_kernel, n_layers, out_pads, bf16_epilogue)

    out = pl.pallas_call(
        kernel,
        out_shape=jax.ShapeDtypeStruct((num_tiles, 1, tb), jnp.float32),
        grid=(num_tiles,),
        in_specs=in_specs,
        # (None, 1, tb): leading grid dim squeezed; kernel sees a (1, tb) tile.
        out_specs=pl.BlockSpec((None, 1, tb), lambda i: (i, 0, 0)),
        compiler_params=pltpu.CompilerParams(
            dimension_semantics=("parallel",),   # shard batch across v7x's 2 TCs
            vmem_limit_bytes=_vmem_limit_bytes(tb, f0p, prepped)),
    )(*operands)

    # (num_tiles, 1, tb) -> (Bp,) in batch order -> (B, 1)
    return out.reshape(Bp)[:B].reshape(B, 1)


def init_params(key, n_users, n_items, k, layer_sizes):
    """Deterministic init mirroring the module's __init__ (std=0.01 normals)."""
    keys = jax.random.split(key, 3 + 2 * len(layer_sizes))
    params = {}
    params["P"] = 0.01 * jax.random.normal(keys[0], (n_users, k), jnp.float32)
    params["Q"] = 0.01 * jax.random.normal(keys[1], (n_items, k), jnp.float32)

    layers = []
    prev_size = 2 * k
    for i, size in enumerate(layer_sizes):
        wk, bk = keys[2 + 2 * i], keys[3 + 2 * i]
        # stored as (in, out)  (transpose of PyTorch's (out, in))
        W = 0.01 * jax.random.normal(wk, (prev_size, size), jnp.float32)
        b = 0.01 * jax.random.normal(bk, (size,), jnp.float32)
        layers.append((W, b))
        prev_size = size
    params["layers"] = layers
    params["h"] = 0.01 * jax.random.normal(keys[-1], (prev_size, 1), jnp.float32)
    return params


def _matched_reference(params, user_ids, item_ids, bf16_epilogue):
    """Pure-JAX reference mirroring exactly what the kernel computes."""
    pu = jnp.take(params["P"], user_ids, axis=0)
    qi = jnp.take(params["Q"], item_ids, axis=0)
    x = jnp.concatenate([pu, qi], axis=1).astype(jnp.bfloat16)
    for (W, b) in params["layers"]:
        y = jnp.dot(x, W.astype(jnp.bfloat16), preferred_element_type=jnp.float32)
        if bf16_epilogue:
            y = y.astype(jnp.bfloat16) + b.astype(jnp.bfloat16)
        else:
            y = y + b
        x = jnp.maximum(y, 0.0).astype(jnp.bfloat16)
    return jnp.dot(x, params["h"].astype(jnp.bfloat16),
                   preferred_element_type=jnp.float32)


if __name__ == "__main__":
    key = jax.random.PRNGKey(0)
    n_users, n_items = 100, 200
    k = 16
    layer_sizes = [32, 16, 8]
    batch = 256      # -> TB=128, 2 grid tiles (both v7x TCs active)

    pkey, ukey, ikey = jax.random.split(key, 3)
    params = init_params(pkey, n_users, n_items, k, layer_sizes)
    prepped = prepare_params(params)     # one-time padding / bf16 cast

    user_ids = jax.random.randint(ukey, (batch,), 0, n_users, dtype=jnp.int32)
    item_ids = jax.random.randint(ikey, (batch,), 0, n_items, dtype=jnp.int32)

    out = mlp_forward(user_ids, item_ids, prepped)
    jax.block_until_ready(out)
    assert out.shape == (batch, 1), out.shape

    # Matched-precision reference (bf16 matmul inputs, f32 accumulation,
    # device-matched epilogue dtype).
    ref = _matched_reference(params, user_ids, item_ids,
                             prepped["meta"]["bf16_epilogue"])
    assert jnp.allclose(out, ref, atol=1e-4, rtol=1e-2), "mismatch vs bf16 reference"

    # Loose sanity check vs the full-f32 math of the original module.
    x32 = jnp.concatenate([jnp.take(params["P"], user_ids, axis=0),
                           jnp.take(params["Q"], item_ids, axis=0)], axis=1)
    for (W, b) in params["layers"]:
        x32 = jnp.maximum(x32 @ W + b, 0.0)
    ref32 = x32 @ params["h"]
    assert jnp.allclose(out, ref32, atol=1e-3), "mismatch vs f32 reference"

    print("KERNEL_OK")
</pallas_src>

<mosaic_0001>
module attributes {stable_mosaic.version = 11 : i64} {
  func.func @_mlp_kernel(%arg0: i32, %arg1: memref<128x128xbf16, #tpu.memory_space<vmem>>, %arg2: memref<128x128xbf16, #tpu.memory_space<vmem>>, %arg3: memref<128x128xbf16, #tpu.memory_space<vmem>>, %arg4: memref<128x128xbf16, #tpu.memory_space<vmem>>, %arg5: memref<3x128xf32, #tpu.memory_space<vmem>>, %arg6: memref<1x128xbf16, #tpu.memory_space<vmem>>, %arg7: memref<1x1x128xf32, #tpu.memory_space<vmem>>) attributes {dimension_semantics = [#tpu.dimension_semantics<parallel>], iteration_bounds = array<i64: 2>, scalar_prefetch = 0 : i64, scratch_operands = 0 : i64, tpu.core_type = #tpu.core_type<tc>, window_params = [{transform_indices = @transform_0, window_bounds = array<i64: 128, 128>}, {pipeline_mode = #tpu.pipeline_mode<synchronous>, transform_indices = @transform_1, window_bounds = array<i64: 128, 128>}, {pipeline_mode = #tpu.pipeline_mode<synchronous>, transform_indices = @transform_2, window_bounds = array<i64: 128, 128>}, {pipeline_mode = #tpu.pipeline_mode<synchronous>, transform_indices = @transform_3, window_bounds = array<i64: 128, 128>}, {pipeline_mode = #tpu.pipeline_mode<synchronous>, transform_indices = @transform_4, window_bounds = array<i64: 3, 128>}, {pipeline_mode = #tpu.pipeline_mode<synchronous>, transform_indices = @transform_5, window_bounds = array<i64: 1, 128>}, {transform_indices = @transform_6, window_bounds = array<i64: 1, 1, 128>}]} {
    %c0 = arith.constant 0 : index
    %c0_0 = arith.constant 0 : index
    %0 = vector.load %arg1[%c0, %c0_0] : memref<128x128xbf16, #tpu.memory_space<vmem>>, vector<128x128xbf16>
    %c0_1 = arith.constant 0 : index
    %c0_2 = arith.constant 0 : index
    %1 = vector.load %arg2[%c0_1, %c0_2] : memref<128x128xbf16, #tpu.memory_space<vmem>>, vector<128x128xbf16>
    %c0_3 = arith.constant 0 : index
    %c0_4 = arith.constant 0 : index
    %2 = vector.load %arg5[%c0_3, %c0_4] : memref<3x128xf32, #tpu.memory_space<vmem>>, vector<1x128xf32>
    %cst = arith.constant dense<0.000000e+00> : vector<128x128xf32>
    %3 = tpu.matmul %0, %1, %cst {dimension_numbers = #tpu.dot_dimension_numbers<[1], [0], [0], [1], [0, 0, 1, 1], [], []>} : vector<128x128xbf16>, vector<128x128xbf16>, vector<128x128xf32> -> vector<128x128xf32>
    %4 = vector.broadcast %2 : vector<1x128xf32> to vector<128x128xf32>
    %5 = arith.addf %3, %4 : vector<128x128xf32>
    %cst_5 = arith.constant 0.000000e+00 : f32
    %6 = vector.broadcast %cst_5 : f32 to vector<128x128xf32>
    %7 = arith.maximumf %5, %6 : vector<128x128xf32>
    %8 = arith.truncf %7 : vector<128x128xf32> to vector<128x128xbf16>
    %c0_6 = arith.constant 0 : index
    %c0_7 = arith.constant 0 : index
    %9 = vector.load %arg3[%c0_6, %c0_7] : memref<128x128xbf16, #tpu.memory_space<vmem>>, vector<128x128xbf16>
    %c1 = arith.constant 1 : index
    %c0_8 = arith.constant 0 : index
    %10 = vector.load %arg5[%c1, %c0_8] : memref<3x128xf32, #tpu.memory_space<vmem>>, vector<1x128xf32>
    %cst_9 = arith.constant dense<0.000000e+00> : vector<128x128xf32>
    %11 = tpu.matmul %8, %9, %cst_9 {dimension_numbers = #tpu.dot_dimension_numbers<[1], [0], [0], [1], [0, 0, 1, 1], [], []>} : vector<128x128xbf16>, vector<128x128xbf16>, vector<128x128xf32> -> vector<128x128xf32>
    %12 = vector.broadcast %10 : vector<1x128xf32> to vector<128x128xf32>
    %13 = arith.addf %11, %12 : vector<128x128xf32>
    %cst_10 = arith.constant 0.000000e+00 : f32
    %14 = vector.broadcast %cst_10 : f32 to vector<128x128xf32>
    %15 = arith.maximumf %13, %14 : vector<128x128xf32>
    %16 = arith.truncf %15 : vector<128x128xf32> to vector<128x128xbf16>
    %c0_11 = arith.constant 0 : index
    %c0_12 = arith.constant 0 : index
    %17 = vector.load %arg4[%c0_11, %c0_12] : memref<128x128xbf16, #tpu.memory_space<vmem>>, vector<128x128xbf16>
    %c2 = arith.constant 2 : index
    %c0_13 = arith.constant 0 : index
    %18 = vector.load %arg5[%c2, %c0_13] : memref<3x128xf32, #tpu.memory_space<vmem>>, vector<1x128xf32>
    %cst_14 = arith.constant dense<0.000000e+00> : vector<128x128xf32>
    %19 = tpu.matmul %16, %17, %cst_14 {dimension_numbers = #tpu.dot_dimension_numbers<[1], [0], [0], [1], [0, 0, 1, 1], [], []>} : vector<128x128xbf16>, vector<128x128xbf16>, vector<128x128xf32> -> vector<128x128xf32>
    %20 = vector.broadcast %18 : vector<1x128xf32> to vector<128x128xf32>
    %21 = arith.addf %19, %20 : vector<128x128xf32>
    %cst_15 = arith.constant 0.000000e+00 : f32
    %22 = vector.broadcast %cst_15 : f32 to vector<128x128xf32>
    %23 = arith.maximumf %21, %22 : vector<128x128xf32>
    %24 = arith.truncf %23 : vector<128x128xf32> to vector<128x128xbf16>
    %c0_16 = arith.constant 0 : index
    %c0_17 = arith.constant 0 : index
    %25 = vector.load %arg6[%c0_16, %c0_17] : memref<1x128xbf16, #tpu.memory_space<vmem>>, vector<1x128xbf16>
    %cst_18 = arith.constant dense<0.000000e+00> : vector<1x128xf32>
    %26 = tpu.matmul %25, %24, %cst_18 {dimension_numbers = #tpu.dot_dimension_numbers<[1], [1], [0], [0], [0, 0, 1, 0], [], []>} : vector<1x128xbf16>, vector<128x128xbf16>, vector<1x128xf32> -> vector<1x128xf32>
    %c0_19 = arith.constant 0 : index
    %c0_20 = arith.constant 0 : index
    %c0_21 = arith.constant 0 : index
    %27 = vector.load %arg7[%c0_19, %c0_20, %c0_21] : memref<1x1x128xf32, #tpu.memory_space<vmem>>, vector<1x1x128xf32>
    %28 = vector.shape_cast %27 : vector<1x1x128xf32> to vector<1x128xf32>
    %29 = vector.shape_cast %26 : vector<1x128xf32> to vector<1x1x128xf32>
    tpu.vector_store %arg7[%c0_19, %c0_20, %c0_21], %29 {strides = array<i32>} : memref<1x1x128xf32, #tpu.memory_space<vmem>>, vector<1x1x128xf32>,
    return
  }
  func.func @transform_0(%arg0: i32) -> (i32, i32) {
    %c0_i32 = arith.constant 0 : i32
    %c0_i32_0 = arith.constant 0 : i32
    return %arg0, %c0_i32 : i32, i32
  }
  func.func @transform_1(%arg0: i32) -> (i32, i32) {
    %c0_i32 = arith.constant 0 : i32
    %c0_i32_0 = arith.constant 0 : i32
    %c0_i32_1 = arith.constant 0 : i32
    return %c0_i32, %c0_i32_0 : i32, i32
  }
  func.func @transform_2(%arg0: i32) -> (i32, i32) {
    %c0_i32 = arith.constant 0 : i32
    %c0_i32_0 = arith.constant 0 : i32
    %c0_i32_1 = arith.constant 0 : i32
    return %c0_i32, %c0_i32_0 : i32, i32
  }
  func.func @transform_3(%arg0: i32) -> (i32, i32) {
    %c0_i32 = arith.constant 0 : i32
    %c0_i32_0 = arith.constant 0 : i32
    %c0_i32_1 = arith.constant 0 : i32
    return %c0_i32, %c0_i32_0 : i32, i32
  }
  func.func @transform_4(%arg0: i32) -> (i32, i32) {
    %c0_i32 = arith.constant 0 : i32
    %c0_i32_0 = arith.constant 0 : i32
    %c0_i32_1 = arith.constant 0 : i32
    return %c0_i32, %c0_i32_0 : i32, i32
  }
  func.func @transform_5(%arg0: i32) -> (i32, i32) {
    %c0_i32 = arith.constant 0 : i32
    %c0_i32_0 = arith.constant 0 : i32
    %c0_i32_1 = arith.constant 0 : i32
    return %c0_i32, %c0_i32_0 : i32, i32
  }
  func.func @transform_6(%arg0: i32) -> (i32, i32, i32) {
    %c0_i32 = arith.constant 0 : i32
    %c0_i32_0 = arith.constant 0 : i32
    %c0_i32_1 = arith.constant 0 : i32
    return %arg0, %c0_i32, %c0_i32_0 : i32, i32, i32
  }
}

</mosaic_0001>

<bundles_post_ra>
// kernel: tpu_custom_call.1
= control target key start
LH: loop header
LB: loop body
LE: loop exit
PB: predicated region body
PF: predicated region fallthrough
CT: control target
= control target key end

     0   :  { %11 = vsyncpa [#allocation3], 0  ;;  %s1694_s0 = inlined_call_operand.hbm [shape: bf16[256,128], index: 0, kind: input, shape index: {}]   ;;  %s1695_s1 = inlined_call_operand.hbm [shape: bf16[128,128], index: 1, kind: input, shape index: {}]   ;;  %s1696_s2 = inlined_call_operand.hbm [shape: bf16[128,128], index: 2, kind: input, shape index: {}]   ;;  %s1697_s3 = inlined_call_operand.hbm [shape: bf16[128,128], index: 3, kind: input, shape index: {}]   ;;  %s1698_s4 = inlined_call_operand.hbm [shape: f32[3,128], index: 4, kind: input, shape index: {}]   ;;  %s1699_s5 = inlined_call_operand.vmem [shape: bf16[1,128], index: 5, kind: input, shape index: {}]   ;;  %s1700_s6 = inlined_call_operand.hbm [shape: f32[2,1,128], index: 6, kind: output, shape index: {}]  }
   0x1   :  { %13 = vsyncpa [#allocation3 + $0x1], 0 }
   0x2   :  { %14 = vsyncpa [#allocation6], 0 }
   0x3   :  { %15 = vsyncpa [#allocation9], 0 }
   0x4   :  { %16 = vsyncpa [#allocation4], 0 }
   0x5   :  { %18 = vsyncpa [#allocation4 + $0x1], 0  ;;  %s1487_s21 = smov 0   ;;  %s1489_s22 = smov 0  }
   0x6   :  { %s1491_s23 = smov 0   ;;  %s1493_s24 = smov 0  }
   0x7 LB: > { %s1508_s25 = sadd.s32 4294967295, %s1444_s24   ;;  %s949_s26 = sadd.s32 4294967294, %s1444_s24   ;;  %s1444_s24 = sphi %s1493_s24, %s1715_s24   ;;  %s1440_s23 = sphi %s1491_s23, %s1714_s23   ;;  %s1436_s22 = sphi %s1489_s22, %s1713_s22   ;;  %s1432_s21 = sphi %s1487_s21, %s1712_s21  }
   0x8   : > { %p44_p0 = scmp.ne.s32.totalorder %s1436_s22, %s1432_s21  ;;  %p45_p1 = scmp.eq.s32.totalorder %s1508_s25, 0 }
   0x9   : > { %p173_p2 = scmp.eq.s32.totalorder %s1508_s25, 1  ;;  %p179_p3 = scmp.eq.s32.totalorder %s949_s26, 1 }
   0xa   : > { %p1517_p4 = por %p45_p1, %p44_p0  ;;  %p950_p5 = scmp.ge.s32.totalorder %s1444_s24, 1 }
   0xb   : > { %p1522_p6 = por %p179_p3, %p44_p0  ;;  %p186_p7 = scmp.lt.s32.totalorder %s1444_s24, 3 }
   0xc   : > { %s197_s7 = sshll.u32 %s1695_s1, 4  ;;  %s1446_s9 = smov [#allocation5]   ;;  %s198_s7 = int_to_ptr.hbm [resolvable:$true] %s197_s7 }
   0xd   : > { %p1530_p8 = pnand %p950_p5, %p186_p7  ;;  %s199_s10 = sshll.u32 %s1446_s9, 4  ;;  %s200_s10 = int_to_ptr.vmem [resolvable:$true] %s199_s10 }
   0xe   : > { %s225_s14 = sshll.u32 %s1697_s3, 4  ;;  %s1701_s15 = smov 64   ;;  %s226_s14 = int_to_ptr.hbm [resolvable:$true] %s225_s14 }
   0xf   : > { %p1148_p9 = pneg %p1530_p8  ;;  %s1702_s16 = smov 4  }
  0x10   : > { %s1449_s17 = smov [#allocation8]   ;;  %s211_s26 = sshll.u32 %s1696_s2, 4  ;;  %s212_s26 = int_to_ptr.hbm [resolvable:$true] %s211_s26 }
  0x11   : > { %p1538_p10 = pnand %p1148_p9, %p45_p1  ;;  %s227_s18 = sshll.u32 %s1449_s17, 4  ;;  %s228_s18 = int_to_ptr.vmem [resolvable:$true] %s227_s18 }
  0x12   : > { %s1450_s9 = smov [#allocation7]   ;;  %s1451_s12 = smov [#allocation10]  }
  0x13   : > { %1151 = dma.hbm_to_vmem [thread:$0]  (!%p1538_p10), %s198_s7, 1024, %s200_s10, [#allocation6], %s1701_s15, %s1701_s15, %s1702_s16  }
  0x14   : > { %1157 = dma.hbm_to_vmem [thread:$0]  (!%p1538_p10), %s226_s14, 1024, %s228_s18, [#allocation9], %s1701_s15, %s1701_s15, %s1702_s16  }
  0x15   : > { %s240_s7 = sshll.u32 %s1698_s4, 4  ;;  %s213_s10 = sshll.u32 %s1450_s9, 4  ;;  %s241_s7 = int_to_ptr.hbm [resolvable:$true] %s240_s7  ;;  %s214_s10 = int_to_ptr.vmem [resolvable:$true] %s213_s10 }
  0x16   : > { %1154 = dma.hbm_to_vmem [thread:$0]  (!%p1538_p10), %s212_s26, 1024, %s214_s10, [#allocation6], %s1701_s15, %s1701_s15, %s1702_s16  }
  0x17   : > { %s242_s13 = sshll.u32 %s1451_s12, 4  ;;  %s1570_s14 = sadd.s32 1, %s1444_s24   ;;  %s243_s13 = int_to_ptr.vmem [resolvable:$true] %s242_s13 }
  0x18   : > { %1160 = dma.hbm_to_vmem [thread:$0]  (!%p1538_p10), %s241_s7, 64, %s243_s13, [#allocation9]  }
  0x19   : > { %s31_s17 = sadd.s32 1, %s1440_s23  ;;  %s28_s18 = ssub.s32 %s1444_s24, %s1570_s14 }
  0x1a   : > { %p38_p12 = scmp.ne.s32.totalorder %s1440_s23, %s1436_s22  ;;  %p29_p13 = scmp.eq.s32.totalorder %s28_s18, 0 }
  0x1b   : > { %p39_p0 = scmp.eq.s32.totalorder %s1444_s24, 0  ;;  %p1173_p5 = scmp.lt.s32.totalorder %s1444_s24, 2 }
  0x1c   : > { %p1580_p3 = por %p173_p2, %p38_p12  ;;  %s256_s26 = sand.u32 1, %s1440_s23  }
  0x1d   : > { %s1586_s20 = scalar_select %p29_p13, %s1440_s23, %s31_s17  }
  0x1e   : > { %p40_p7 = por %p39_p0, %p38_p12  ;;  %s956_s11 = sshll.u32 %s256_s26, 6 }
  0x1f   : > { %s1095_s29 = sshll.u32 %s1444_s24, 6  ;;  %s260_s10 = scalar_lea.vmem [#allocation2], %s956_s11 }
  0x20   : > { %s265_s9 = scalar_lea.hbm %s1694_s0, %s1095_s29  ;;  %s268_s12 = sshll.u32 %s260_s10, 4  ;;  %s269_s12 = int_to_ptr.vmem [resolvable:$true] %s268_s12 }
  0x21   : > { %s266_s13 = sshll.u32 %s265_s9, 4  ;;  %p1593_p2 = pnand %p1173_p5, %p40_p7  ;;  %s267_s13 = int_to_ptr.hbm [resolvable:$true] %s266_s13 }
  0x22   : > { %s257_s17 = scalar_lea.sflag [#allocation3], %s256_s26  ;;  %s1340_s15 = sshra.s32 %s267_s13, 4  ;;  %s1341_s15 = int_to_ptr.hbm [resolvable:$true] %s1340_s15 }
  0x23   : > { %s1342_s16 = scalar_lea.hbm %s1341_s15, 64  ;;  %p1344_p10 = pneg %p1593_p2 }
  0x24   : > { %p1343_p9 = scmp.ne.s32.totalorder %s1341_s15, %s1342_s16  ;;  %s1347_s30 = scalar_lea.hbm %s1694_s0, 128 }
  0x25   : > { %p1348_p0 = scmp.lt.s32.totalorder %s1341_s15, %s1694_s0  ;;  %p1349_p5 = scmp.lt.s32.totalorder %s1347_s30, %s1342_s16 }
  0x26   : > { %p1345_p12 = pnand %p1344_p10, %p1343_p9 }
  0x27   : > { %p1350_p7 = por %p1349_p5, %p1348_p0 }
  0x28   : > { %p1346_p13 = pneg %p1345_p12 }
  0x2a   : > { %p1351_p11 = pnand %p1350_p7, %p1346_p13 }
  0x2c   : > { %1354 = shalt.err (!%p1351_p11)
}
  0x2d   : > { %s1709_s26 = smov 4   ;;  %s1710_s10 = smov 64  }
  0x2e   : > { %1164 = dma.hbm_to_vmem [thread:$0]  (!%p1593_p2), %s267_s13, 1024, %s269_s12, %s257_s17, %s1710_s10, %s1710_s10, %s1709_s26  }
  0x2f   : > { %280 = sbr.rel (%p1530_p8) target bundleno = 830 (0x33e), region = 44  ;;  %s1613_s29 = sand.u32 (!%p1530_p8), 1, %s1436_s22  }
  0x30   : > { %s960_s15 = sshll.u32 (!%p1530_p8), %s1613_s29, 6  ;;  %s283_s16 = scalar_lea.sflag (!%p1530_p8), [#allocation3], %s1613_s29 }
  0x31   : > { %s1617_s11 = scalar_lea.vmem (!%p1530_p8), [#allocation2], %s960_s15 }
  0x34   : > { %1415 = dma.done.wait (%p1517_p4), %s283_s16, 1024  }
  0x35   : > { %1417 = vsyncadd (%p1517_p4), %s283_s16, 4294966272 }
  0x36   : > { %1419 = dma.done.wait (%p45_p1), [#allocation6], 2048  }
  0x37   : > { %1421 = vsyncadd (%p45_p1), [#allocation6], 4294965248 }
  0x38   : > { %1423 = dma.done.wait (%p45_p1), [#allocation9], 1088  }
  0x39   : > { %1425 = vsyncadd (%p45_p1), [#allocation9], 4294966208  ;;  %v1111_v0 = vld [vmem:[#allocation5 + $0x38] sm:$0xff]  ;;  %v1110_v1 = vld [vmem:[#allocation5 + $0x30] sm:$0xff]  ;;  %s841_s18 = scalar_lea.hbm %s1700_s6, %s1508_s25  ;;  %s334_s17 = scalar_lea.vmem [#allocation11], %s1613_s29 }
  0x3a   : > { %466 = vmatpush.bf16.msra.mxu0 %v1111_v0  ;;  %v1109_v2 = vld [vmem:[#allocation5 + $0x28] sm:$0xff]  ;;  %v1108_v3 = vld [vmem:[#allocation5 + $0x20] sm:$0xff]  ;;  %v1107_v4 = vld [vmem:[#allocation5 + $0x18] sm:$0xff]  ;;  %s843_s30 = sshll.u32 %s334_s17, 4  ;;  %s845_s7 = sshll.u32 %s841_s18, 4  ;;  %s844_s30 = int_to_ptr.vmem [resolvable:$true] %s843_s30  ;;  %s846_s7 = int_to_ptr.hbm [resolvable:$true] %s845_s7 }
  0x3b   : > { %v1106_v5 = vld [vmem:[#allocation5 + $0x10] sm:$0xff]  ;;  %v1105_v6 = vld [vmem:[#allocation5 + $0x8] sm:$0xff]  ;;  %v1104_v7 = vld [vmem:[#allocation5] sm:$0xff]  ;;  %s833_s9 = scalar_lea.sflag [#allocation4], %s1613_s29  ;;  %s1384_s26 = sshra.s32 %s846_s7, 4  ;;  %s1385_s26 = int_to_ptr.hbm [resolvable:$true] %s1384_s26 }
  0x3c   : > { %v1096_v8 = vld [vmem:[%s1617_s11] sm:$0xff]  ;;  %v1097_v9 = vld [vmem:[%s1617_s11 + $0x8] sm:$0xff]  ;;  %v1098_v10 = vld [vmem:[%s1617_s11 + $0x10] sm:$0xff]  ;;  %s1386_s10 = scalar_lea.hbm %s1385_s26, 1  ;;  %p1391_p11 = scmp.lt.s32.totalorder %s1385_s26, %s1700_s6 }
  0x3d   : > { %v1099_v11 = vld [vmem:[%s1617_s11 + $0x18] sm:$0xff]  ;;  %v1100_v12 = vld [vmem:[%s1617_s11 + $0x20] sm:$0xff]  ;;  %v1101_v14 = vld [vmem:[%s1617_s11 + $0x28] sm:$0xff]  ;;  %p1387_p1 = scmp.ne.s32.totalorder %s1385_s26, %s1386_s10 }
  0x3e   : > { %467 = vmatpush.bf16.msra.mxu0 %v1110_v1  ;;  %v1119_v13 = vld [vmem:[#allocation7 + $0x38] sm:$0xff]  ;;  %v1118_v15 = vld [vmem:[#allocation7 + $0x30] sm:$0xff]  ;;  %v1117_v16 = vld [vmem:[#allocation7 + $0x28] sm:$0xff] }
  0x3f   : > { %605 = vmatpush.bf16.msra.mxu1 %v1119_v13  ;;  %v1116_v17 = vld [vmem:[#allocation7 + $0x20] sm:$0xff]  ;;  %v1115_v18 = vld [vmem:[#allocation7 + $0x18] sm:$0xff]  ;;  %v1102_v19 = vld [vmem:[%s1617_s11 + $0x30] sm:$0xff]  ;;  %p1388_p4 = pnand %p1387_p1, %p1580_p3 }
  0x40   : > { %v1114_v20 = vld [vmem:[#allocation7 + $0x10] sm:$0xff]  ;;  %v1113_v21 = vld [vmem:[#allocation7 + $0x8] sm:$0xff]  ;;  %v1112_v22 = vld [vmem:[#allocation7] sm:$0xff] }
  0x41   : > { %v1103_v23 = vld [vmem:[%s1617_s11 + $0x38] sm:$0xff]  ;;  %v1639_v25 = vld [vmem:[#allocation10] ss:$0 sm:$0xff]  ;;  %p1389_p8 = pneg %p1388_p4  ;;  %s1390_s11 = scalar_lea.hbm %s1700_s6, 2 }
  0x42   : > { %468 = vmatpush.bf16.msra.mxu0 %v1109_v2  ;;  %v1127_v0 = vld [vmem:[#allocation8 + $0x38] sm:$0xff]  ;;  %p1392_p2 = scmp.lt.s32.totalorder %s1390_s11, %s1386_s10 }
  0x43   : > { %606 = vmatpush.bf16.msra.mxu1 %v1118_v15  ;;  %744 = vmatpush.bf16.msra.mxu2 %v1127_v0  ;;  %v1122_v15 = vld [vmem:[#allocation8 + $0x10] sm:$0xff] }
  0x44   : > { %p1393_p9 = por %p1392_p2, %p1391_p11 }
  0x46   : > { %469 = vmatpush.bf16.msra.mxu0 %v1108_v3  ;;  %p1394_p10 = pnand %p1393_p9, %p1389_p8 }
  0x47   : > { %607 = vmatpush.bf16.msra.mxu1 %v1117_v16 }
  0x4a   : > { %470 = vmatpush.bf16.msra.mxu0 %v1107_v4  ;;  %v1126_v4 = vld [vmem:[#allocation8 + $0x30] sm:$0xff] }
  0x4b   : > { %608 = vmatpush.bf16.msra.mxu1 %v1116_v17  ;;  %745 = vmatpush.bf16.msra.mxu2 %v1126_v4  ;;  %v1121_v17 = vld [vmem:[#allocation8 + $0x8] sm:$0xff] }
  0x4e   : > { %471 = vmatpush.bf16.msra.mxu0 %v1106_v5 }
  0x4f   : > { %609 = vmatpush.bf16.msra.mxu1 %v1115_v18  ;;  %v1120_v18 = vld [vmem:[#allocation8] sm:$0xff] }
  0x52   : > { %472 = vmatpush.bf16.msra.mxu0 %v1105_v6  ;;  %v1125_v6 = vld [vmem:[#allocation8 + $0x28] sm:$0xff] }
  0x53   : > { %610 = vmatpush.bf16.msra.mxu1 %v1114_v20  ;;  %746 = vmatpush.bf16.msra.mxu2 %v1125_v6 }
  0x56   : > { %473 = vmatpush.bf16.msra.mxu0 %v1104_v7  ;;  %v1124_v7 = vld [vmem:[#allocation8 + $0x20] sm:$0xff] }
  0x57   : > { %611 = vmatpush.bf16.msra.mxu1 %v1113_v21  ;;  %747 = vmatpush.bf16.msra.mxu2 %v1124_v7 }
  0x59   : > { %474 = vmatmul.bf16.vlgmr.msra.gmra.mxu0 %v1096_v8 }
  0x5b   : > { %612 = vmatpush.bf16.msra.mxu1 %v1112_v22 }
  0x69   : > { %479 = vmatmul.bf16.gmra.mxu0 %v1097_v9 }
  0x79   : > { %484 = vmatmul.bf16.gmra.mxu0 %v1098_v10 }
  0x89   : > { %489 = vmatmul.bf16.gmra.mxu0 %v1099_v11  ;;  %v1123_v11 = vld [vmem:[#allocation8 + $0x18] sm:$0xff] }
  0x8a   : > { %748 = vmatpush.bf16.msra.mxu2 %v1123_v11 }
  0x8e   : > { %749 = vmatpush.bf16.msra.mxu2 %v1122_v15 }
  0x92   : > { %750 = vmatpush.bf16.msra.mxu2 %v1121_v17 }
  0x96   : > { %751 = vmatpush.bf16.msra.mxu2 %v1120_v18 }
  0x99   : > { %494 = vmatmul.bf16.gmra.mxu0 %v1100_v12 }
  0xa9   : > { %499 = vmatmul.bf16.gmra.mxu0 %v1101_v14 }
  0xb9   : > { %504 = vmatmul.bf16.gmra.mxu0 %v1102_v19 }
  0xc9   : > { %509 = vmatmul.bf16.gmra.mxu0 %v1103_v23 }
  0xd6   : > { %v475_v24 = vpop.f32.mrf.mxu0 }
  0xd7   : > { %v476_v26 = vadd.f32 %v1639_v25, %v475_v24 }
  0xd9   : > { %v515_v29 = vmax.f32 %v476_v26, 0.0 }
  0xde   : > { %v477_v27 = vpop.f32.mrf.mxu0 }
  0xdf   : > { %v478_v28 = vadd.f32 %v1639_v25, %v477_v27  ;;  %v1218_v27 = vld [vmem:[#allocation10 + $0x1] ss:$0 sm:$0xff] }
  0xe1   : > { %v516_v30 = vmax.f32 %v478_v28, 0.0 }
  0xe3   : > { %v531_v31 = vpack.c.bf16 %v516_v30, %v515_v29 }
  0xe5   : > { %613 = vmatmul.bf16.vlgmr.msra.gmra.mxu1 %v531_v31 }
  0xe6   : > { %v480_v32 = vpop.f32.mrf.mxu0 }
  0xe7   : > { %v481_v33 = vadd.f32 %v1639_v25, %v480_v32 }
  0xe9   : > { %v517_v36 = vmax.f32 %v481_v33, 0.0 }
  0xee   : > { %v482_v34 = vpop.f32.mrf.mxu0 }
  0xef   : > { %v483_v35 = vadd.f32 %v1639_v25, %v482_v34 }
  0xf1   : > { %v518_v37 = vmax.f32 %v483_v35, 0.0 }
  0xf3   : > { %v532_v38 = vpack.c.bf16 %v518_v37, %v517_v36 }
  0xf5   : > { %618 = vmatmul.bf16.gmra.mxu1 %v532_v38 }
  0xf6   : > { %v485_v39 = vpop.f32.mrf.mxu0 }
  0xf7   : > { %v486_v40 = vadd.f32 %v1639_v25, %v485_v39 }
  0xf9   : > { %v519_v43 = vmax.f32 %v486_v40, 0.0 }
  0xfe   : > { %v487_v41 = vpop.f32.mrf.mxu0 }
  0xff   : > { %v488_v42 = vadd.f32 %v1639_v25, %v487_v41 }
 0x101   : > { %v520_v44 = vmax.f32 %v488_v42, 0.0 }
 0x103   : > { %v533_v45 = vpack.c.bf16 %v520_v44, %v519_v43 }
 0x105   : > { %623 = vmatmul.bf16.gmra.mxu1 %v533_v45 }
 0x106   : > { %v490_v46 = vpop.f32.mrf.mxu0 }
 0x107   : > { %v491_v47 = vadd.f32 %v1639_v25, %v490_v46 }
 0x109   : > { %v521_v50 = vmax.f32 %v491_v47, 0.0 }
 0x10e   : > { %v492_v48 = vpop.f32.mrf.mxu0 }
 0x10f   : > { %v493_v49 = vadd.f32 %v1639_v25, %v492_v48 }
 0x111   : > { %v522_v51 = vmax.f32 %v493_v49, 0.0 }
 0x113   : > { %v534_v52 = vpack.c.bf16 %v522_v51, %v521_v50 }
 0x115   : > { %628 = vmatmul.bf16.gmra.mxu1 %v534_v52 }
 0x116   : > { %v495_v53 = vpop.f32.mrf.mxu0 }
 0x117   : > { %v496_v54 = vadd.f32 %v1639_v25, %v495_v53 }
 0x119   : > { %v523_v57 = vmax.f32 %v496_v54, 0.0 }
 0x11e   : > { %v497_v55 = vpop.f32.mrf.mxu0 }
 0x11f   : > { %v498_v56 = vadd.f32 %v1639_v25, %v497_v55 }
 0x121   : > { %v524_v58 = vmax.f32 %v498_v56, 0.0 }
 0x123   : > { %v535_v59 = vpack.c.bf16 %v524_v58, %v523_v57 }
 0x125   : > { %633 = vmatmul.bf16.gmra.mxu1 %v535_v59 }
 0x126   : > { %v500_v60 = vpop.f32.mrf.mxu0 }
 0x127   : > { %v501_v61 = vadd.f32 %v1639_v25, %v500_v60 }
 0x129   : > { %v525_v1 = vmax.f32 %v501_v61, 0.0 }
 0x12e   : > { %v502_v62 = vpop.f32.mrf.mxu0 }
 0x12f   : > { %v503_v63 = vadd.f32 %v1639_v25, %v502_v62 }
 0x131   : > { %v526_v2 = vmax.f32 %v503_v63, 0.0 }
 0x133   : > { %v536_v3 = vpack.c.bf16 %v526_v2, %v525_v1 }
 0x135   : > { %638 = vmatmul.bf16.gmra.mxu1 %v536_v3 }
 0x136   : > { %v505_v5 = vpop.f32.mrf.mxu0 }
 0x137   : > { %v506_v8 = vadd.f32 %v1639_v25, %v505_v5 }
 0x139   : > { %v527_v12 = vmax.f32 %v506_v8, 0.0 }
 0x13e   : > { %v507_v9 = vpop.f32.mrf.mxu0 }
 0x13f   : > { %v508_v10 = vadd.f32 %v1639_v25, %v507_v9 }
 0x141   : > { %v528_v13 = vmax.f32 %v508_v10, 0.0 }
 0x143   : > { %v537_v14 = vpack.c.bf16 %v528_v13, %v527_v12 }
 0x145   : > { %643 = vmatmul.bf16.gmra.mxu1 %v537_v14 }
 0x146   : > { %v510_v16 = vpop.f32.mrf.mxu0 }
 0x147   : > { %v511_v19 = vadd.f32 %v1639_v25, %v510_v16 }
 0x149   : > { %v529_v22 = vmax.f32 %v511_v19, 0.0  ;;  %v1219_v19 = vld [vmem:[#allocation10 + $0x2] ss:$0 sm:$0xff] }
 0x14e   : > { %v512_v20 = vpop.f32.mrf.mxu0 }
 0x14f   : > { %v513_v21 = vadd.f32 %v1639_v25, %v512_v20 }
 0x151   : > { %v530_v23 = vmax.f32 %v513_v21, 0.0 }
 0x153   : > { %v538_v24 = vpack.c.bf16 %v530_v23, %v529_v22 }
 0x155   : > { %648 = vmatmul.bf16.gmra.mxu1 %v538_v24 }
 0x162   : > { %v614_v26 = vpop.f32.mrf.mxu1 }
 0x163   : > { %v615_v28 = vadd.f32 %v1218_v27, %v614_v26 }
 0x165   : > { %v654_v31 = vmax.f32 %v615_v28, 0.0 }
 0x16a   : > { %v616_v29 = vpop.f32.mrf.mxu1 }
 0x16b   : > { %v617_v30 = vadd.f32 %v1218_v27, %v616_v29 }
 0x16d   : > { %v655_v32 = vmax.f32 %v617_v30, 0.0 }
 0x16f   : > { %v670_v33 = vpack.c.bf16 %v655_v32, %v654_v31 }
 0x171   : > { %752 = vmatmul.bf16.vlgmr.msra.gmra.mxu2 %v670_v33 }
 0x172   : > { %v619_v34 = vpop.f32.mrf.mxu1 }
 0x173   : > { %v620_v35 = vadd.f32 %v1218_v27, %v619_v34 }
 0x175   : > { %v656_v38 = vmax.f32 %v620_v35, 0.0 }
 0x17a   : > { %v621_v36 = vpop.f32.mrf.mxu1 }
 0x17b   : > { %v622_v37 = vadd.f32 %v1218_v27, %v621_v36 }
 0x17d   : > { %v657_v39 = vmax.f32 %v622_v37, 0.0 }
 0x17f   : > { %v671_v25 = vpack.c.bf16 %v657_v39, %v656_v38 }
 0x181   : > { %757 = vmatmul.bf16.gmra.mxu2 %v671_v25 }
 0x182   : > { %v624_v40 = vpop.f32.mrf.mxu1 }
 0x183   : > { %v625_v41 = vadd.f32 %v1218_v27, %v624_v40 }
 0x185   : > { %v658_v44 = vmax.f32 %v625_v41, 0.0 }
 0x18a   : > { %v626_v42 = vpop.f32.mrf.mxu1 }
 0x18b   : > { %v627_v43 = vadd.f32 %v1218_v27, %v626_v42 }
 0x18d   : > { %v659_v45 = vmax.f32 %v627_v43, 0.0 }
 0x18f   : > { %v672_v46 = vpack.c.bf16 %v659_v45, %v658_v44 }
 0x191   : > { %762 = vmatmul.bf16.gmra.mxu2 %v672_v46 }
 0x192   : > { %v629_v47 = vpop.f32.mrf.mxu1 }
 0x193   : > { %v630_v48 = vadd.f32 %v1218_v27, %v629_v47 }
 0x195   : > { %v660_v51 = vmax.f32 %v630_v48, 0.0 }
 0x19a   : > { %v631_v49 = vpop.f32.mrf.mxu1 }
 0x19b   : > { %v632_v50 = vadd.f32 %v1218_v27, %v631_v49 }
 0x19d   : > { %v661_v52 = vmax.f32 %v632_v50, 0.0 }
 0x19f   : > { %v673_v53 = vpack.c.bf16 %v661_v52, %v660_v51 }
 0x1a1   : > { %767 = vmatmul.bf16.gmra.mxu2 %v673_v53 }
 0x1a2   : > { %v634_v54 = vpop.f32.mrf.mxu1 }
 0x1a3   : > { %v635_v55 = vadd.f32 %v1218_v27, %v634_v54 }
 0x1a5   : > { %v662_v58 = vmax.f32 %v635_v55, 0.0 }
 0x1aa   : > { %v636_v56 = vpop.f32.mrf.mxu1 }
 0x1ab   : > { %v637_v57 = vadd.f32 %v1218_v27, %v636_v56 }
 0x1ad   : > { %v663_v59 = vmax.f32 %v637_v57, 0.0 }
 0x1af   : > { %v674_v60 = vpack.c.bf16 %v663_v59, %v662_v58 }
 0x1b1   : > { %772 = vmatmul.bf16.gmra.mxu2 %v674_v60 }
 0x1b2   : > { %v639_v61 = vpop.f32.mrf.mxu1 }
 0x1b3   : > { %v640_v62 = vadd.f32 %v1218_v27, %v639_v61 }
 0x1b5   : > { %v664_v1 = vmax.f32 %v640_v62, 0.0 }
 0x1ba   : > { %v641_v63 = vpop.f32.mrf.mxu1 }
 0x1bb   : > { %v642_v0 = vadd.f32 %v1218_v27, %v641_v63 }
 0x1bd   : > { %v665_v2 = vmax.f32 %v642_v0, 0.0 }
 0x1bf   : > { %v675_v3 = vpack.c.bf16 %v665_v2, %v664_v1 }
 0x1c1   : > { %777 = vmatmul.bf16.gmra.mxu2 %v675_v3 }
 0x1c2   : > { %v644_v4 = vpop.f32.mrf.mxu1 }
 0x1c3   : > { %v645_v5 = vadd.f32 %v1218_v27, %v644_v4 }
 0x1c5   : > { %v666_v8 = vmax.f32 %v645_v5, 0.0 }
 0x1ca   : > { %v646_v6 = vpop.f32.mrf.mxu1 }
 0x1cb   : > { %v647_v7 = vadd.f32 %v1218_v27, %v646_v6 }
 0x1cd   : > { %v667_v9 = vmax.f32 %v647_v7, 0.0 }
 0x1cf   : > { %v676_v10 = vpack.c.bf16 %v667_v9, %v666_v8 }
 0x1d1   : > { %782 = vmatmul.bf16.gmra.mxu2 %v676_v10 }
 0x1d2   : > { %v649_v11 = vpop.f32.mrf.mxu1 }
 0x1d3   : > { %v650_v12 = vadd.f32 %v1218_v27, %v649_v11  ;;  %v817_v11 = vld [vmem:[%s1699_s5] sm:$0x1] }
 0x1d5   : > { %v668_v15 = vmax.f32 %v650_v12, 0.0 }
 0x1da   : > { %v651_v13 = vpop.f32.mrf.mxu1 }
 0x1db   : > { %v652_v14 = vadd.f32 %v1218_v27, %v651_v13 }
 0x1dd   : > { %v669_v16 = vmax.f32 %v652_v14, 0.0 }
 0x1df   : > { %v677_v17 = vpack.c.bf16 %v669_v16, %v668_v15 }
 0x1e1   : > { %787 = vmatmul.bf16.gmra.mxu2 %v677_v17 }
 0x1f4   : > { %v753_v18 = vpop.f32.mrf.mxu2 }
 0x1f5   : > { %v754_v20 = vadd.f32 %v1219_v19, %v753_v18 }
 0x1f7   : > { %v793_v23 = vmax.f32 %v754_v20, 0.0 }
 0x1fc   : > { %v755_v21 = vpop.f32.mrf.mxu2 }
 0x1fd   : > { %v756_v22 = vadd.f32 %v1219_v19, %v755_v21 }
 0x1ff   : > { %v794_v24 = vmax.f32 %v756_v22, 0.0 }
 0x201   : > { %v809_v26 = vpack.c.bf16 %v794_v24, %v793_v23 }
 0x204   : > { %v758_v28 = vpop.f32.mrf.mxu2 }
 0x205   : > { %v759_v29 = vadd.f32 %v1219_v19, %v758_v28 }
 0x207   : > { %v795_v32 = vmax.f32 %v759_v29, 0.0 }
 0x20c   : > { %v760_v30 = vpop.f32.mrf.mxu2 }
 0x20d   : > { %v761_v31 = vadd.f32 %v1219_v19, %v760_v30 }
 0x20f   : > { %v796_v33 = vmax.f32 %v761_v31, 0.0 }
 0x211   : > { %v810_v34 = vpack.c.bf16 %v796_v33, %v795_v32 }
 0x214   : > { %v763_v27 = vpop.f32.mrf.mxu2 }
 0x215   : > { %v764_v35 = vadd.f32 %v1219_v19, %v763_v27 }
 0x217   : > { %v797_v38 = vmax.f32 %v764_v35, 0.0 }
 0x21c   : > { %v765_v36 = vpop.f32.mrf.mxu2 }
 0x21d   : > { %v766_v37 = vadd.f32 %v1219_v19, %v765_v36 }
 0x21f   : > { %v798_v39 = vmax.f32 %v766_v37, 0.0 }
 0x221   : > { %v811_v25 = vpack.c.bf16 %v798_v39, %v797_v38 }
 0x224   : > { %v768_v40 = vpop.f32.mrf.mxu2 }
 0x225   : > { %v769_v41 = vadd.f32 %v1219_v19, %v768_v40 }
 0x227   : > { %v799_v44 = vmax.f32 %v769_v41, 0.0 }
 0x22c   : > { %v770_v42 = vpop.f32.mrf.mxu2 }
 0x22d   : > { %v771_v43 = vadd.f32 %v1219_v19, %v770_v42 }
 0x22f   : > { %v800_v45 = vmax.f32 %v771_v43, 0.0 }
 0x231   : > { %v812_v46 = vpack.c.bf16 %v800_v45, %v799_v44 }
 0x234   : > { %v773_v47 = vpop.f32.mrf.mxu2 }
 0x235   : > { %v774_v48 = vadd.f32 %v1219_v19, %v773_v47 }
 0x237   : > { %v801_v51 = vmax.f32 %v774_v48, 0.0 }
 0x23c   : > { %v775_v49 = vpop.f32.mrf.mxu2 }
 0x23d   : > { %v776_v50 = vadd.f32 %v1219_v19, %v775_v49 }
 0x23f   : > { %v802_v52 = vmax.f32 %v776_v50, 0.0 }
 0x241   : > { %v813_v53 = vpack.c.bf16 %v802_v52, %v801_v51 }
 0x244   : > { %v778_v54 = vpop.f32.mrf.mxu2 }
 0x245   : > { %v779_v7 = vadd.f32 %v1219_v19, %v778_v54 }
 0x247   : > { %v803_v9 = vmax.f32 %v779_v7, 0.0 }
 0x24c   : > { %v780_v55 = vpop.f32.mrf.mxu2 }
 0x24d   : > { %v781_v5 = vadd.f32 %v1219_v19, %v780_v55 }
 0x24f   : > { %v804_v8 = vmax.f32 %v781_v5, 0.0 }
 0x251   : > { %v814_v10 = vpack.c.bf16 %v804_v8, %v803_v9 }
 0x254   : > { %v783_v56 = vpop.f32.mrf.mxu2 }
 0x255   : > { %v784_v2 = vadd.f32 %v1219_v19, %v783_v56 }
 0x257   : > { %v805_v4 = vmax.f32 %v784_v2, 0.0 }
 0x25c   : > { %v785_v57 = vpop.f32.mrf.mxu2 }
 0x25d   : > { %v786_v0 = vadd.f32 %v1219_v19, %v785_v57 }
 0x25f   : > { %v806_v3 = vmax.f32 %v786_v0, 0.0 }
 0x261   : > { %v815_v6 = vpack.c.bf16 %v806_v3, %v805_v4 }
 0x264   : > { %v788_v58 = vpop.f32.mrf.mxu2 }
 0x265   : > { %v789_v59 = vadd.f32 %v1219_v19, %v788_v58 }
 0x267   : > { %v807_v62 = vmax.f32 %v789_v59, 0.0 }
 0x26c   : > { %v790_v60 = vpop.f32.mrf.mxu2 }
 0x26d   : > { %v791_v61 = vadd.f32 %v1219_v19, %v790_v60 }
 0x26f   : > { %v808_v63 = vmax.f32 %v791_v61, 0.0 }
 0x271   : > { %v816_v1 = vpack.c.bf16 %v808_v63, %v807_v62 }
 0x273   : > { %818 = vmatpush.bf16.xpose.msra.mxu3 %v816_v1 }
 0x27b   : > { %819 = vmatpush.bf16.xpose.msra.mxu3 %v815_v6 }
 0x283   : > { %820 = vmatpush.bf16.xpose.msra.mxu3 %v814_v10 }
 0x28b   : > { %821 = vmatpush.bf16.xpose.msra.mxu3 %v813_v53 }
 0x293   : > { %822 = vmatpush.bf16.xpose.msra.mxu3 %v812_v46 }
 0x29b   : > { %823 = vmatpush.bf16.xpose.msra.mxu3 %v811_v25 }
 0x2a3   : > { %824 = vmatpush.bf16.xpose.msra.mxu3 %v810_v34 }
 0x2ab   : > { %825 = vmatpush.bf16.xpose.msra.mxu3 %v809_v26 }
 0x2b2   : > { %826 = vmatmul.bf16.vlgmr.msra.gmra.mxu3 %v817_v11 }
 0x335   : > { %v827_v12 = vpop.f32.mrf.mxu3 }
 0x336   : > { %831 = vst [vmem:[%s334_s17] sm:$0x1] %v827_v12 }
 0x337   : > { %1397 = shalt.err (!%p1394_p10)
}
 0x338   : > { %1146 = dma.vmem_to_hbm [thread:$0]  (%p1580_p3), %s844_s30, 16, %s846_s7, %s833_s9  }
 0x33d   : > { %v829_v13 = vpop.f32.mrf.mxu3 }
 0x33e PF: > { %s857_s29 = sand.u32 1, %s1432_s21   ;;  %p1711_p12 = scmp.ge.s32.totalorder %s1444_s24, 2 }
 0x33f   : > { %s858_s8 = scalar_lea.sflag [#allocation4], %s857_s29 }
 0x340   : > { %p1166_p13 = pnand %p1711_p12, %p1522_p6 }
 0x342   : > { %p1167_p0 = pneg %p1166_p13 }
 0x344   : > { %1427 = dma.done.wait (%p1167_p0), %s858_s8, 16  }
 0x345   : > { %1429 = vsyncadd (%p1167_p0), %s858_s8, 4294967280  ;;  %p21_p5 = scmp.ge.s32.totalorder %s1570_s14, 4   ;;  %s1712_s21 = smov %s1436_s22 }
 0x346   : > { %s1713_s22 = smov %s1440_s23  ;;  %s1714_s23 = smov %s1586_s20 }
 0x347   : > { %s1715_s24 = smov %s1570_s14  ;;  %23 = sbr.rel (!%p21_p5) target bundleno = 7 (0x7), region = 105 }
 0x34c   :  { %863 = vsyncpa [#allocation3], 1 }
 0x34d   :  { %865 = vsyncpa [#allocation3 + $0x1], 1 }
 0x34e   :  { %866 = vsyncpa [#allocation6], 1 }
 0x34f   :  { %867 = vsyncpa [#allocation9], 1 }
 0x350   :  { %868 = vsyncpa [#allocation4], 1 }
 0x351   :  { %870 = vsyncpa [#allocation4 + $0x1], 1 }

</bundles_post_ra>
